<compile_context>
chip_gen: v5e
topology: v5e:2x2
jax: 0.10.0
libtpu: 0.0.40
codegen_flags: <defaults>
</compile_context>

<pallas_src>
import functools
import math

import jax
import jax.numpy as jnp
from jax.experimental import pallas as pl
from jax.experimental.pallas import tpu as pltpu

D_MODEL = 256
DROPOUT_P = 0.1
MAX_LEN = 5000

# P(keep) = KEEP_THRESHOLD / 2**32 ≈ 1 - DROPOUT_P (exact to within 2**-32).
KEEP_THRESHOLD = int((1.0 - DROPOUT_P) * float(2 ** 32))


def make_positional_encoding(max_len: int, d_model: int) -> jnp.ndarray:
    """Deterministic pe buffer, identical formula to the PyTorch __init__."""
    position = jnp.arange(max_len, dtype=jnp.float32)[:, None]              # (L, 1)
    div_term = jnp.exp(
        jnp.arange(0, d_model, 2, dtype=jnp.float32) * (-math.log(10000.0) / d_model)
    )                                                                        # (D/2,)
    pe = jnp.zeros((max_len, d_model), dtype=jnp.float32)
    pe = pe.at[:, 0::2].set(jnp.sin(position * div_term))
    pe = pe.at[:, 1::2].set(jnp.cos(position * div_term))
    return pe[:, None, :]                                                    # (L, 1, D)


# ----------------------------- kernels ------------------------------------ #

def _pe_add_kernel(x_ref, pe_ref, o_ref, *, n_rep, d):
    # x_ref/o_ref: (ts, n_rep*D), pe_ref: (ts, D).  Broadcast pe over the batch
    # axis with static 128-lane-aligned chunk adds (free ref views, no VMEM
    # temporary for a replicated pe).
    pe = pe_ref[...]
    for r in range(n_rep):
        sl = slice(r * d, (r + 1) * d)
        o_ref[:, sl] = x_ref[:, sl] + pe


def _pe_add_dropout_kernel(seed_ref, x_ref, pe_ref, o_ref, *, n_rep, d):
    # Training mode: add + inverted dropout using the on-chip PRNG.
    i = pl.program_id(0)
    j = pl.program_id(1)
    pltpu.prng_seed(seed_ref[0] + i * pl.num_programs(1) + j)
    pe = pe_ref[...]
    scale = jnp.float32(1.0 / (1.0 - DROPOUT_P))
    for r in range(n_rep):
        sl = slice(r * d, (r + 1) * d)
        y = x_ref[:, sl] + pe
        bits = pltpu.prng_random_bits(y.shape)            # one (ts, D) chunk of bits
        if bits.dtype != jnp.uint32:                      # no-op if already uint32
            bits = pltpu.bitcast(bits, jnp.uint32)
        keep = bits < jnp.uint32(KEEP_THRESHOLD)          # P(keep) = 1 - p
        o_ref[:, sl] = (y * jnp.where(keep, scale, jnp.float32(0.0))).astype(o_ref.dtype)


# ----------------------------- wrapper ------------------------------------ #

def _round_up(n: int, m: int) -> int:
    return ((n + m - 1) // m) * m


def _cdiv(a: int, b: int) -> int:
    return -(-a // b)


def _is_v7x() -> bool:
    try:
        kind = jax.devices()[0].device_kind.lower()
    except Exception:
        return False
    return ("v7" in kind) or ("7x" in kind)


def positional_encoding(x: jnp.ndarray,
                        pe: jnp.ndarray,
                        *,
                        training: bool = False,
                        seed: int = 0) -> jnp.ndarray:
    """x: (S, B, D) float32, pe: (max_len, 1, D) float32 -> (S, B, D)."""
    S, B, D = x.shape
    assert D % 128 == 0, "d_model must be a multiple of 128 for lane-dense blocks"
    BD = B * D
    x2 = x.reshape(S, BD)           # row-major view -> lane-dense slab
    pe2 = pe[:S, 0, :]              # (S, D)

    is_v7 = _is_v7x()
    # ~4 MiB x-blocks on v7x (3.2 TB/s -> amortize per-step overhead),
    # ~2 MiB on v5e/v6e.  Double-buffered x + out + pe stays well under the
    # 32 MiB scoped VMEM limit in both cases.
    target_block_bytes = (4 if is_v7 else 2) * 1024 * 1024

    # Lane tiling in multiples of D: bound the block size for wide B*D so an
    # 8-row block can never exceed the budget (robust against large batches).
    nb = B
    if B * D * 4 * 8 > target_block_bytes:
        nb = max(1, target_block_bytes // (D * 4 * 8))
        nb = min(nb, B)
    lane_w = nb * D

    # Sequence tile: fill the per-block budget, multiple of 8 sublanes, grid
    # handles ragged S via cdiv (last block padded-read / masked-write).
    ts = max(8, (target_block_bytes // (lane_w * 4)) // 8 * 8)
    ts = min(ts, _round_up(S, 8))
    # v7x has 2 TensorCores: make sure the parallel axis has >=2 steps when S
    # allows it, so both cores get work.
    if is_v7 and S > 8 and _cdiv(S, ts) < 2:
        ts = max(8, _round_up(_cdiv(S, 2), 8))

    grid = (_cdiv(S, ts), _cdiv(B, nb))

    x_spec = pl.BlockSpec((ts, lane_w), lambda i, j, *_: (i, j))
    pe_spec = pl.BlockSpec((ts, D), lambda i, j, *_: (i, 0))
    o_spec = pl.BlockSpec((ts, lane_w), lambda i, j, *_: (i, j))

    cost = pl.CostEstimate(
        flops=(3 if training else 1) * S * BD,
        transcendentals=0,
        bytes_accessed=2 * S * BD * 4 + grid[1] * S * D * 4,
    )
    cparams = pltpu.CompilerParams(
        # Both axes are independent output tiles -> shardable across TCs (v7x).
        dimension_semantics=("parallel", "parallel"),
        # Explicit raise on v5e (default scoped VMEM is 16 MiB there); this is
        # the default on v7x, so no blanket raise eating its 64 MiB VMEM.
        vmem_limit_bytes=32 * 1024 * 1024,
    )

    if not training:
        out2 = pl.pallas_call(
            functools.partial(_pe_add_kernel, n_rep=nb, d=D),
            out_shape=jax.ShapeDtypeStruct((S, BD), x.dtype),
            grid_spec=pltpu.PrefetchScalarGridSpec(
                num_scalar_prefetch=0,
                grid=grid,
                in_specs=[x_spec, pe_spec],
                out_specs=o_spec,
            ),
            compiler_params=cparams,
            cost_estimate=cost,
        )(x2, pe2)
    else:
        seed_arr = jnp.array([seed], dtype=jnp.int32)
        out2 = pl.pallas_call(
            functools.partial(_pe_add_dropout_kernel, n_rep=nb, d=D),
            out_shape=jax.ShapeDtypeStruct((S, BD), x.dtype),
            grid_spec=pltpu.PrefetchScalarGridSpec(
                num_scalar_prefetch=1,              # seed lands in SMEM
                grid=grid,
                in_specs=[x_spec, pe_spec],
                out_specs=o_spec,
            ),
            compiler_params=cparams,
            cost_estimate=cost,
        )(seed_arr, x2, pe2)

    return out2.reshape(S, B, D)


# ------------------------------- main -------------------------------------- #

if __name__ == "__main__":
    key = jax.random.PRNGKey(0)
    S, B, D = 8, 2, D_MODEL                 # seq=8, batch=2, d_model=256
    x = jax.random.normal(key, (S, B, D), dtype=jnp.float32)

    pe = make_positional_encoding(MAX_LEN, D)

    # Eval mode (dropout = identity): must match the pure-JAX reference exactly.
    y_eval = jax.block_until_ready(positional_encoding(x, pe, training=False))
    ref = x + pe[:S]
    assert y_eval.shape == (S, B, D)
    assert jnp.allclose(y_eval, ref, atol=1e-6, rtol=1e-6), "eval-mode mismatch"

    # Training mode uses the TPU on-chip PRNG (pltpu.prng_seed/prng_random_bits),
    # which has no CPU/interpret lowering, so only exercise it on a real TPU
    # backend. Statistics are checked, not the exact torch RNG stream.
    # TODO(synk): torch's dropout RNG stream cannot be reproduced bit-for-bit;
    # the on-chip PRNG matches only the keep probability and 1/(1-p) scaling.
    if jax.default_backend() == "tpu":
        y_train = jax.block_until_ready(
            positional_encoding(x, pe, training=True, seed=1234))
        assert y_train.shape == (S, B, D)
        assert bool(jnp.all(jnp.isfinite(y_train)))
        kept = y_train != 0.0
        # kept values are exactly ref / (1 - p)
        assert jnp.allclose(
            jnp.where(kept, y_train * (1.0 - DROPOUT_P), 0.0),
            jnp.where(kept, ref, 0.0),
            atol=1e-5, rtol=1e-5,
        ), "train-mode dropout scaling mismatch"

    print("KERNEL_OK")
</pallas_src>

<mosaic_0001>
module attributes {stable_mosaic.version = 11 : i64} {
  func.func @_pe_add_kernel(%arg0: i32, %arg1: i32, %arg2: memref<8x512xf32, #tpu.memory_space<vmem>>, %arg3: memref<8x256xf32, #tpu.memory_space<vmem>>, %arg4: memref<8x512xf32, #tpu.memory_space<vmem>>) attributes {dimension_semantics = [#tpu.dimension_semantics<parallel>, #tpu.dimension_semantics<parallel>], iteration_bounds = array<i64: 1, 1>, scalar_prefetch = 0 : i64, scratch_operands = 0 : i64, tpu.core_type = #tpu.core_type<tc>, window_params = [{transform_indices = @transform_0, window_bounds = array<i64: 8, 512>}, {transform_indices = @transform_1, window_bounds = array<i64: 8, 256>}, {transform_indices = @transform_2, window_bounds = array<i64: 8, 512>}]} {
    %c0 = arith.constant 0 : index
    %c0_0 = arith.constant 0 : index
    %0 = vector.load %arg3[%c0, %c0_0] : memref<8x256xf32, #tpu.memory_space<vmem>>, vector<8x256xf32>
    %c0_1 = arith.constant 0 : index
    %c0_2 = arith.constant 0 : index
    %1 = vector.load %arg2[%c0_1, %c0_2] : memref<8x512xf32, #tpu.memory_space<vmem>>, vector<8x256xf32>
    %2 = arith.addf %1, %0 : vector<8x256xf32>
    %c0_3 = arith.constant 0 : index
    %c0_4 = arith.constant 0 : index
    %3 = vector.load %arg4[%c0_3, %c0_4] : memref<8x512xf32, #tpu.memory_space<vmem>>, vector<8x256xf32>
    tpu.vector_store %arg4[%c0_3, %c0_4], %2 {strides = array<i32>} : memref<8x512xf32, #tpu.memory_space<vmem>>, vector<8x256xf32>,
    %c0_5 = arith.constant 0 : index
    %c256 = arith.constant 256 : index
    %4 = vector.load %arg2[%c0_5, %c256] : memref<8x512xf32, #tpu.memory_space<vmem>>, vector<8x256xf32>
    %5 = arith.addf %4, %0 : vector<8x256xf32>
    %c0_6 = arith.constant 0 : index
    %c256_7 = arith.constant 256 : index
    %6 = vector.load %arg4[%c0_6, %c256_7] : memref<8x512xf32, #tpu.memory_space<vmem>>, vector<8x256xf32>
    tpu.vector_store %arg4[%c0_6, %c256_7], %5 {strides = array<i32>} : memref<8x512xf32, #tpu.memory_space<vmem>>, vector<8x256xf32>,
    return
  }
  func.func @transform_0(%arg0: i32, %arg1: i32) -> (i32, i32) {
    %c0_i32 = arith.constant 0 : i32
    return %arg0, %arg1 : i32, i32
  }
  func.func @transform_1(%arg0: i32, %arg1: i32) -> (i32, i32) {
    %c0_i32 = arith.constant 0 : i32
    %c0_i32_0 = arith.constant 0 : i32
    return %arg0, %c0_i32 : i32, i32
  }
  func.func @transform_2(%arg0: i32, %arg1: i32) -> (i32, i32) {
    %c0_i32 = arith.constant 0 : i32
    return %arg0, %arg1 : i32, i32
  }
}

</mosaic_0001>

<bundles_post_ra>
// kernel: tpu_custom_call.1
= control target key start
LH: loop header
LB: loop body
LE: loop exit
PB: predicated region body
PF: predicated region fallthrough
CT: control target
= control target key end

     0   :  { %7 = vsyncpa [#allocation3], 0  ;;  %s180_s0 = inlined_call_operand.hbm [shape: f32[8,512], index: 0, kind: input, shape index: {}]   ;;  %s181_s1 = inlined_call_operand.hbm [shape: f32[8,256], index: 1, kind: input, shape index: {}]   ;;  %s182_s2 = inlined_call_operand.hbm [shape: f32[8,512], index: 2, kind: output, shape index: {}]  }
   0x1   :  { %8 = vsyncpa [#allocation6], 0 }
   0x2   :  { %9 = vsyncpa [#allocation4], 0  ;;  %s15_s11 = sshll.u32 %s180_s0, 4  ;;  %s153_s12 = smov [#allocation2]   ;;  %s16_s11 = int_to_ptr.hbm [resolvable:$true] %s15_s11 }
   0x3   :  { %s17_s13 = sshll.u32 %s153_s12, 4  ;;  %s26_s16 = sshll.u32 %s181_s1, 4  ;;  %s18_s13 = int_to_ptr.vmem [resolvable:$true] %s17_s13  ;;  %s27_s16 = int_to_ptr.hbm [resolvable:$true] %s26_s16 }
   0x4   :  { %20 = dma.hbm_to_vmem [thread:$0]  %s16_s11, 512, %s18_s13, [#allocation3]  }
   0x5   :  { %s154_s17 = smov [#allocation5]  }
   0x6   :  { %s28_s18 = sshll.u32 %s154_s17, 4  ;;  %s29_s18 = int_to_ptr.vmem [resolvable:$true] %s28_s18 }
   0x7   :  { %31 = dma.hbm_to_vmem [thread:$0]  %s27_s16, 256, %s29_s18, [#allocation6]  }
   0x8   :  { %147 = dma.done.wait [#allocation3], 512  }
   0x9   :  { %148 = vsyncadd [#allocation3], 4294966784 }
   0xa   :  { %149 = dma.done.wait [#allocation6], 256  }
   0xb   :  { %150 = vsyncadd [#allocation6], 4294967040  ;;  %v40_v0 = vld [vmem:[#allocation5] sm:$0xff]  ;;  %v41_v2 = vld [vmem:[#allocation5 + $0x8] sm:$0xff]  ;;  %s155_s0 = smov [#allocation7]   ;;  %s61_s21 = sshll.u32 %s182_s2, 4  ;;  %s62_s21 = int_to_ptr.hbm [resolvable:$true] %s61_s21 }
   0xc   :  { %v42_v1 = vld [vmem:[#allocation2] sm:$0xff]  ;;  %v43_v4 = vld [vmem:[#allocation2 + $0x8] sm:$0xff]  ;;  %v48_v5 = vld [vmem:[#allocation2 + $0x10] sm:$0xff]  ;;  %s59_s19 = sshll.u32 %s155_s0, 4  ;;  %s60_s19 = int_to_ptr.vmem [resolvable:$true] %s59_s19 }
   0xd   :  { %v44_v3 = vadd.f32 %v42_v1, %v40_v0  ;;  %v49_v6 = vld [vmem:[#allocation2 + $0x18] sm:$0xff]  ;;  %v45_v7 = vadd.f32 %v43_v4, %v41_v2  ;;  %v50_v8 = vadd.f32 %v48_v5, %v40_v0 }
   0xe   :  { %v51_v9 = vadd.f32 %v49_v6, %v41_v2 }
   0xf   :  { %46 = vst [vmem:[#allocation7] sm:$0xff] %v44_v3 }
  0x10   :  { %47 = vst [vmem:[#allocation7 + $0x8] sm:$0xff] %v45_v7 }
  0x11   :  { %52 = vst [vmem:[#allocation7 + $0x10] sm:$0xff] %v50_v8 }
  0x12   :  { %53 = vst [vmem:[#allocation7 + $0x18] sm:$0xff] %v51_v9 }
  0x13   :  { %64 = dma.vmem_to_hbm [thread:$0]  %s60_s19, 512, %s62_s21, [#allocation4]  }
  0x14   :  { %151 = dma.done.wait [#allocation4], 512  }
  0x15   :  { %152 = vsyncadd [#allocation4], 4294966784 }
  0x16   :  { %69 = vsyncpa [#allocation3], 1 }
  0x17   :  { %70 = vsyncpa [#allocation6], 1 }
  0x18   :  { %71 = vsyncpa [#allocation4], 1 }

</bundles_post_ra>
